<compile_context>
chip_gen: v7x
topology: tpu7x:2x2x1
jax: 0.10.0
libtpu: 0.0.40
codegen_flags: <defaults>
</compile_context>

<pallas_src>
import jax
import jax.numpy as jnp
from jax.experimental import pallas as pl
from jax.experimental.pallas import tpu as pltpu

VARIABLE_NUM = 8      # "variable_num" in the reference module (undefined there; small synthetic value)
HIDDEN = 100          # logical hidden width (matches the PyTorch module)
HIDDEN_PAD = 128      # padded to the 128-lane vreg width; padding is exact zeros
ONES_ROW = HIDDEN     # padding row (index 100) that carries a constant 1.0 for bias folding
BATCH = 1024          # stands in for (time steps x RK stages x trajectories) fused together
BATCH_TILE = 512      # lane-dense tile over the fused batch axis -> 2 tiles at BATCH=1024


def _odefunc_kernel(x_ref, w1_ref, b1_ref, w23_ref, w4_ref, out_ref):
    """One batch tile of the MLP in transposed (features, batch) layout.

    Weights are bf16 (MXU-native); accumulation, ReLU and the output store are f32.
    All weight refs use constant index_maps -> DMA'd once, resident in VMEM for the grid.
    Biases of layers 2-4 are pre-folded into column ONES_ROW of the weight matrices; the
    constant 1.0 in hidden row ONES_ROW is created by b1[ONES_ROW] = 1 and self-propagated
    by W_aug[ONES_ROW, ONES_ROW] = 1 (ReLU(1) = 1), so no per-layer bias broadcasts remain.
    """
    x = x_ref[...].astype(jnp.bfloat16)                                     # (V, TB)

    # Layer 1: Linear(V, 128) + bias (includes the ones-row seed) + ReLU
    acc = jnp.dot(w1_ref[...], x, preferred_element_type=jnp.float32) + b1_ref[...]
    h = jnp.maximum(acc, 0.0).astype(jnp.bfloat16)                          # (128, TB) bf16

    # Layer 2: Linear(128, 128) + ReLU   (bias folded into column ONES_ROW)
    acc = jnp.dot(w23_ref[0], h, preferred_element_type=jnp.float32)
    h = jnp.maximum(acc, 0.0).astype(jnp.bfloat16)

    # Layer 3: Linear(128, 128) + ReLU   (bias folded)
    acc = jnp.dot(w23_ref[1], h, preferred_element_type=jnp.float32)
    h = jnp.maximum(acc, 0.0).astype(jnp.bfloat16)

    # Layer 4: Linear(128, V)            (bias folded, no activation)
    out_ref[...] = jnp.dot(w4_ref[...], h, preferred_element_type=jnp.float32)


def odefunc_forward_vb(t, y_vb, params, batch_tile=BATCH_TILE):
    """ODE RHS on (variable_num, batch) lane-dense state.

    This is the hot-path entry point: keep the solver state in (V, B) layout (and pad B to
    a multiple of `batch_tile` once, outside the time loop) so every RHS evaluation is a
    single pallas_call with zero wrapper transposes / pads.  `t` is ignored (as in the
    reference module).
    """
    del t
    w1, b1, w23, w4 = params
    V, B = y_vb.shape

    n_tiles = pl.cdiv(B, batch_tile)
    b_pad = n_tiles * batch_tile
    if b_pad != B:  # only taken if the caller did not pre-pad the batch axis
        y_vb = jnp.pad(y_vb, ((0, 0), (0, b_pad - B)))

    resident = lambda shape: pl.BlockSpec(shape, lambda i: (0,) * len(shape))

    out = pl.pallas_call(
        _odefunc_kernel,
        out_shape=jax.ShapeDtypeStruct((V, b_pad), jnp.float32),
        grid=(n_tiles,),
        in_specs=[
            pl.BlockSpec((V, batch_tile), lambda i: (0, i)),   # x tile (lane-dense batch)
            resident(w1.shape),                                # (128, V)      bf16
            resident(b1.shape),                                # (128, 1)      f32
            resident(w23.shape),                               # (2, 128, 128) bf16
            resident(w4.shape),                                # (V, 128)      bf16
        ],
        out_specs=pl.BlockSpec((V, batch_tile), lambda i: (0, i)),
        compiler_params=pltpu.CompilerParams(
            dimension_semantics=("parallel",),   # shard batch tiles across v7x's 2 TCs
        ),
    )(y_vb, w1, b1, w23, w4)

    return out[:, :B] if b_pad != B else out


def odefunc_forward(t, y, params, batch_tile=BATCH_TILE):
    """ODEFunc.forward(t, y) with y in the PyTorch (batch, variable_num) layout.

    Compatibility wrapper: one transpose in / one transpose out.  Inside an ODE-solver
    loop, keep the state in (V, B) layout and call odefunc_forward_vb directly instead.
    """
    return odefunc_forward_vb(t, y.T, params, batch_tile=batch_tile).T


def init_params(key, variable_num=VARIABLE_NUM, bias_std=0.0):
    """Init matching the reference: weight ~ N(0, 0.1), bias = 0 (bias_std=0).

    Returns (kernel_params, master_params):
      * master_params: plain f32 PyTorch-layout (out, in) weights + biases, for reference.
      * kernel_params: padded / packed / bf16 operands for the Pallas kernel:
          w1  : (128, V)      bf16, rows 100..127 zero
          b1  : (128, 1)      f32, b1[ONES_ROW] = 1.0  (seeds the constant ones row)
          w23 : (2, 128, 128) bf16, layer-2/3 weights with bias folded into column
                ONES_ROW and W[ONES_ROW, ONES_ROW] = 1 to propagate the ones row
          w4  : (V, 128)      bf16, layer-4 weight with bias folded into column ONES_ROW
    The padded rows/columns are exact zeros, so the padded/folded network is numerically
    identical (up to bf16 weight rounding) to the 100-wide reference.
    """
    dims = [(HIDDEN, variable_num), (HIDDEN, HIDDEN), (HIDDEN, HIDDEN), (variable_num, HIDDEN)]
    master = []
    for dout, din in dims:
        key, kw, kb = jax.random.split(key, 3)
        w = 0.1 * jax.random.normal(kw, (dout, din), dtype=jnp.float32)
        b = bias_std * jax.random.normal(kb, (dout,), dtype=jnp.float32)
        master.append((w, b))

    (w1f, b1f), (w2f, b2f), (w3f, b3f), (w4f, b4f) = master

    # Layer 1: padded weight + padded bias (f32) with the ones-row seed.
    w1 = jnp.zeros((HIDDEN_PAD, variable_num), jnp.float32).at[:HIDDEN, :].set(w1f)
    b1 = jnp.zeros((HIDDEN_PAD, 1), jnp.float32).at[:HIDDEN, 0].set(b1f)
    b1 = b1.at[ONES_ROW, 0].set(1.0)

    # Layers 2 & 3: augmented (bias-folded, ones-row-propagating) weights, packed together.
    def augment_hidden(wf, bf):
        wa = jnp.zeros((HIDDEN_PAD, HIDDEN_PAD), jnp.float32)
        wa = wa.at[:HIDDEN, :HIDDEN].set(wf)
        wa = wa.at[:HIDDEN, ONES_ROW].set(bf)       # bias column
        wa = wa.at[ONES_ROW, ONES_ROW].set(1.0)     # keep the ones row alive
        return wa

    w23 = jnp.stack([augment_hidden(w2f, b2f), augment_hidden(w3f, b3f)], axis=0)

    # Layer 4: augmented output weight (bias folded into column ONES_ROW).
    w4 = jnp.zeros((variable_num, HIDDEN_PAD), jnp.float32)
    w4 = w4.at[:, :HIDDEN].set(w4f)
    w4 = w4.at[:, ONES_ROW].set(b4f)

    kernel_params = (w1.astype(jnp.bfloat16), b1,
                     w23.astype(jnp.bfloat16), w4.astype(jnp.bfloat16))
    return kernel_params, master


def reference_forward(y, master_params):
    """Plain-JAX f32 reference in the standard (batch, features) layout."""
    (w1, b1), (w2, b2), (w3, b3), (w4, b4) = master_params
    h = jnp.maximum(y @ w1.T + b1, 0.0)
    h = jnp.maximum(h @ w2.T + b2, 0.0)
    h = jnp.maximum(h @ w3.T + b3, 0.0)
    return h @ w4.T + b4


if __name__ == "__main__":
    key = jax.random.PRNGKey(0)
    k_params, k_y, k_params2 = jax.random.split(key, 3)

    # BATCH rows stand in for the fused (time-steps x RK-stages x trajectories) axis an
    # ODE solver would evaluate the RHS on; the solver step itself should be jit'd so the
    # pallas_call is not dispatched cold per evaluation.
    y = jax.random.normal(k_y, (BATCH, VARIABLE_NUM), dtype=jnp.float32)
    t = jnp.float32(0.0)  # unused, mirrors the signature forward(t, y)
    fwd = jax.jit(odefunc_forward)

    # Check 1: faithful PyTorch init (weight ~ N(0, 0.1), bias = 0).
    params, master = init_params(k_params, bias_std=0.0)
    out = jax.block_until_ready(fwd(t, y, params))
    ref = reference_forward(y, master)
    assert out.shape == (BATCH, VARIABLE_NUM)
    assert jnp.allclose(out, ref, atol=3e-2, rtol=3e-2), "mismatch vs JAX reference (zero bias)"

    # Check 2: nonzero biases, to exercise the folded-bias / ones-row path.
    params2, master2 = init_params(k_params2, bias_std=0.05)
    out2 = jax.block_until_ready(fwd(t, y, params2))
    ref2 = reference_forward(y, master2)
    assert jnp.allclose(out2, ref2, atol=3e-2, rtol=3e-2), "mismatch vs JAX reference (nonzero bias)"

    print("KERNEL_OK")
</pallas_src>

<mosaic_0001>
module attributes {stable_mosaic.version = 11 : i64} {
  func.func @_odefunc_kernel(%arg0: i32, %arg1: memref<8x512xf32, #tpu.memory_space<vmem>>, %arg2: memref<128x8xbf16, #tpu.memory_space<vmem>>, %arg3: memref<128x1xf32, #tpu.memory_space<vmem>>, %arg4: memref<2x128x128xbf16, #tpu.memory_space<vmem>>, %arg5: memref<8x128xbf16, #tpu.memory_space<vmem>>, %arg6: memref<8x512xf32, #tpu.memory_space<vmem>>) attributes {dimension_semantics = [#tpu.dimension_semantics<parallel>], iteration_bounds = array<i64: 2>, scalar_prefetch = 0 : i64, scratch_operands = 0 : i64, tpu.core_type = #tpu.core_type<tc>, window_params = [{transform_indices = @transform_0, window_bounds = array<i64: 8, 512>}, {pipeline_mode = #tpu.pipeline_mode<synchronous>, transform_indices = @transform_1, window_bounds = array<i64: 128, 8>}, {pipeline_mode = #tpu.pipeline_mode<synchronous>, transform_indices = @transform_2, window_bounds = array<i64: 128, 1>}, {pipeline_mode = #tpu.pipeline_mode<synchronous>, transform_indices = @transform_3, window_bounds = array<i64: 2, 128, 128>}, {pipeline_mode = #tpu.pipeline_mode<synchronous>, transform_indices = @transform_4, window_bounds = array<i64: 8, 128>}, {transform_indices = @transform_5, window_bounds = array<i64: 8, 512>}]} {
    %c0 = arith.constant 0 : index
    %c0_0 = arith.constant 0 : index
    %0 = vector.load %arg1[%c0, %c0_0] : memref<8x512xf32, #tpu.memory_space<vmem>>, vector<8x512xf32>
    %1 = arith.truncf %0 : vector<8x512xf32> to vector<8x512xbf16>
    %c0_1 = arith.constant 0 : index
    %c0_2 = arith.constant 0 : index
    %2 = vector.load %arg2[%c0_1, %c0_2] : memref<128x8xbf16, #tpu.memory_space<vmem>>, vector<128x8xbf16>
    %cst = arith.constant dense<0.000000e+00> : vector<128x512xf32>
    %3 = tpu.matmul %2, %1, %cst {dimension_numbers = #tpu.dot_dimension_numbers<[1], [0], [0], [1], [0, 0, 1, 1], [], []>} : vector<128x8xbf16>, vector<8x512xbf16>, vector<128x512xf32> -> vector<128x512xf32>
    %c0_3 = arith.constant 0 : index
    %c0_4 = arith.constant 0 : index
    %4 = vector.load %arg3[%c0_3, %c0_4] : memref<128x1xf32, #tpu.memory_space<vmem>>, vector<128x1xf32>
    %5 = vector.broadcast %4 : vector<128x1xf32> to vector<128x512xf32>
    %6 = arith.addf %3, %5 : vector<128x512xf32>
    %cst_5 = arith.constant 0.000000e+00 : f32
    %7 = vector.broadcast %cst_5 : f32 to vector<128x512xf32>
    %8 = arith.maximumf %6, %7 : vector<128x512xf32>
    %9 = arith.truncf %8 : vector<128x512xf32> to vector<128x512xbf16>
    %c0_6 = arith.constant 0 : index
    %c0_7 = arith.constant 0 : index
    %c0_8 = arith.constant 0 : index
    %10 = vector.load %arg4[%c0_6, %c0_7, %c0_8] : memref<2x128x128xbf16, #tpu.memory_space<vmem>>, vector<1x128x128xbf16>
    %11 = vector.shape_cast %10 : vector<1x128x128xbf16> to vector<128x128xbf16>
    %cst_9 = arith.constant dense<0.000000e+00> : vector<128x512xf32>
    %12 = tpu.matmul %11, %9, %cst_9 {dimension_numbers = #tpu.dot_dimension_numbers<[1], [0], [0], [1], [0, 0, 1, 1], [], []>} : vector<128x128xbf16>, vector<128x512xbf16>, vector<128x512xf32> -> vector<128x512xf32>
    %cst_10 = arith.constant 0.000000e+00 : f32
    %13 = vector.broadcast %cst_10 : f32 to vector<128x512xf32>
    %14 = arith.maximumf %12, %13 : vector<128x512xf32>
    %15 = arith.truncf %14 : vector<128x512xf32> to vector<128x512xbf16>
    %c1 = arith.constant 1 : index
    %c0_11 = arith.constant 0 : index
    %c0_12 = arith.constant 0 : index
    %16 = vector.load %arg4[%c1, %c0_11, %c0_12] : memref<2x128x128xbf16, #tpu.memory_space<vmem>>, vector<1x128x128xbf16>
    %17 = vector.shape_cast %16 : vector<1x128x128xbf16> to vector<128x128xbf16>
    %cst_13 = arith.constant dense<0.000000e+00> : vector<128x512xf32>
    %18 = tpu.matmul %17, %15, %cst_13 {dimension_numbers = #tpu.dot_dimension_numbers<[1], [0], [0], [1], [0, 0, 1, 1], [], []>} : vector<128x128xbf16>, vector<128x512xbf16>, vector<128x512xf32> -> vector<128x512xf32>
    %cst_14 = arith.constant 0.000000e+00 : f32
    %19 = vector.broadcast %cst_14 : f32 to vector<128x512xf32>
    %20 = arith.maximumf %18, %19 : vector<128x512xf32>
    %21 = arith.truncf %20 : vector<128x512xf32> to vector<128x512xbf16>
    %c0_15 = arith.constant 0 : index
    %c0_16 = arith.constant 0 : index
    %22 = vector.load %arg5[%c0_15, %c0_16] : memref<8x128xbf16, #tpu.memory_space<vmem>>, vector<8x128xbf16>
    %cst_17 = arith.constant dense<0.000000e+00> : vector<8x512xf32>
    %23 = tpu.matmul %22, %21, %cst_17 {dimension_numbers = #tpu.dot_dimension_numbers<[1], [0], [0], [1], [0, 0, 1, 1], [], []>} : vector<8x128xbf16>, vector<128x512xbf16>, vector<8x512xf32> -> vector<8x512xf32>
    %c0_18 = arith.constant 0 : index
    %c0_19 = arith.constant 0 : index
    %24 = vector.load %arg6[%c0_18, %c0_19] : memref<8x512xf32, #tpu.memory_space<vmem>>, vector<8x512xf32>
    tpu.vector_store %arg6[%c0_18, %c0_19], %23 {strides = array<i32>} : memref<8x512xf32, #tpu.memory_space<vmem>>, vector<8x512xf32>,
    return
  }
  func.func @transform_0(%arg0: i32) -> (i32, i32) {
    %c0_i32 = arith.constant 0 : i32
    %c0_i32_0 = arith.constant 0 : i32
    return %c0_i32, %arg0 : i32, i32
  }
  func.func @transform_1(%arg0: i32) -> (i32, i32) {
    %c0_i32 = arith.constant 0 : i32
    %c0_i32_0 = arith.constant 0 : i32
    %c0_i32_1 = arith.constant 0 : i32
    return %c0_i32, %c0_i32_0 : i32, i32
  }
  func.func @transform_2(%arg0: i32) -> (i32, i32) {
    %c0_i32 = arith.constant 0 : i32
    %c0_i32_0 = arith.constant 0 : i32
    %c0_i32_1 = arith.constant 0 : i32
    return %c0_i32, %c0_i32_0 : i32, i32
  }
  func.func @transform_3(%arg0: i32) -> (i32, i32, i32) {
    %c0_i32 = arith.constant 0 : i32
    %c0_i32_0 = arith.constant 0 : i32
    %c0_i32_1 = arith.constant 0 : i32
    %c0_i32_2 = arith.constant 0 : i32
    return %c0_i32, %c0_i32_0, %c0_i32_1 : i32, i32, i32
  }
  func.func @transform_4(%arg0: i32) -> (i32, i32) {
    %c0_i32 = arith.constant 0 : i32
    %c0_i32_0 = arith.constant 0 : i32
    %c0_i32_1 = arith.constant 0 : i32
    return %c0_i32, %c0_i32_0 : i32, i32
  }
  func.func @transform_5(%arg0: i32) -> (i32, i32) {
    %c0_i32 = arith.constant 0 : i32
    %c0_i32_0 = arith.constant 0 : i32
    return %c0_i32, %arg0 : i32, i32
  }
}

</mosaic_0001>

<bundles_post_ra>
// kernel: odefunc_forward.1
= control target key start
LH: loop header
LB: loop body
LE: loop exit
PB: predicated region body
PF: predicated region fallthrough
CT: control target
= control target key end

     0   :  { %10 = vsyncpa [#allocation3], 0  ;;  %s2204_s0 = inlined_call_operand.vmem [shape: f32[8,1024], index: 0, kind: input, shape index: {}]   ;;  %s2205_s1 = inlined_call_operand.vmem [shape: bf16[128,8], index: 1, kind: input, shape index: {}]   ;;  %s2206_s2 = inlined_call_operand.vmem [shape: f32[128,1], index: 2, kind: input, shape index: {}]   ;;  %s2207_s3 = inlined_call_operand.vmem [shape: bf16[2,128,128], index: 3, kind: input, shape index: {}]   ;;  %s2208_s4 = inlined_call_operand.vmem [shape: bf16[8,128], index: 4, kind: input, shape index: {}]   ;;  %s2209_s5 = inlined_call_operand.hbm [shape: f32[8,1024], index: 5, kind: output, shape index: {}]  }
   0x1   :  { %12 = vsyncpa [#allocation3 + $0x1], 0  ;;  %s1914_s18 = smov 0   ;;  %s1916_s19 = smov 0  }
   0x2   :  { %s1918_s20 = smov 0   ;;  %s1920_s21 = smov 0  }
   0x3 LB: > { %s1935_s22 = sadd.s32 4294967295, %s1880_s21   ;;  %s1681_s23 = sadd.s32 4294967294, %s1880_s21   ;;  %s1880_s21 = sphi %s1920_s21, %s2215_s21   ;;  %s1876_s20 = sphi %s1918_s20, %s2214_s20   ;;  %s1872_s19 = sphi %s1916_s19, %s2213_s19   ;;  %s1868_s18 = sphi %s1914_s18, %s2212_s18  }
   0x4   : > { %s1939_s24 = sadd.s32 1, %s1880_s21   ;;  %s135_s25 = sadd.s32 1, %s1876_s20 }
   0x5   : > { %s132_s26 = ssub.s32 %s1880_s21, %s1939_s24  ;;  %p145_p0 = scmp.ne.s32.totalorder %s1876_s20, %s1872_s19 }
   0x6   : > { %p133_p1 = scmp.eq.s32.totalorder %s132_s26, 0  ;;  %p146_p2 = scmp.eq.s32.totalorder %s1935_s22, 1 }
   0x7   : > { %p151_p3 = scmp.ne.s32.totalorder %s1872_s19, %s1868_s18  ;;  %p152_p4 = scmp.eq.s32.totalorder %s1681_s23, 1 }
   0x8   : > { %s1950_s27 = scalar_select %p133_p1, %s1876_s20, %s135_s25  }
   0x9   : > { %p1952_p5 = por %p146_p2, %p145_p0  ;;  %p1956_p6 = por %p152_p4, %p151_p3 }
   0xa   : > { %p1684_p7 = scmp.ge.s32.totalorder %s1880_s21, 1  ;;  %p191_p8 = scmp.lt.s32.totalorder %s1880_s21, 3 }
   0xc   : > { %p192_p9 = pnand %p1684_p7, %p191_p8 }
   0xd   : > { %s1686_s30 = sshll.u32 (!%p192_p9), %s1935_s22, 2  ;;  %v1882_v0 = vmov (!%p192_p9), 0   ;;  %vm412_vm0 = vcmask (!%p192_p9), 1043456   ;;  %v251_v9 = vld [vmem:[%s2206_s2] sm:$0xff] (!%p192_p9)  ;;  %v253_v12 = vld [vmem:[%s2206_s2 + $0x10] sm:$0xff] (!%p192_p9)  ;;  %vm387_vm1 = vcmask (!%p192_p9), 64512  }
   0xe   : > { %195 = sbr.rel (%p192_p9) target bundleno = 1099 (0x44b), region = 40  ;;  %p220_p10 = scmp.lt.s32.totalorder (!%p192_p9), %s1686_s30, 7  ;;  %457 = vmatprep.mubr.bf16.mxu0 (!%p192_p9), %v1882_v0  ;;  %570 = vmatprep.mubr.bf16.mxu1 (!%p192_p9), %v1882_v0  ;;  %v1794_v11 = vld [vmem:[%s2205_s1] sm:$0xff] (!%p192_p9)   ;;  %v252_v14 = vld [vmem:[%s2206_s2 + $0x8] sm:$0xff] (!%p192_p9)  ;;  %v254_v15 = vld [vmem:[%s2206_s2 + $0x18] sm:$0xff] (!%p192_p9) }
   0xf   : > { %1792 = vset.pattern.permute.xlu0 (!%p192_p9), %v1882_v0  ;;  %1793 = vset.pattern.permute.xlu1 (!%p192_p9), %v1882_v0  ;;  %v255_v16 = vld [vmem:[%s2206_s2 + $0x20] sm:$0xff] (!%p192_p9)  ;;  %v1795_v17 = vld [vmem:[%s2205_s1 + $0x8] sm:$0xff] (!%p192_p9)   ;;  %v257_v19 = vld [vmem:[%s2206_s2 + $0x30] sm:$0xff] (!%p192_p9)  ;;  %s216_s12 = sand.u32 (!%p192_p9), 1, %s1872_s19   ;;  %s1751_s14 = sshll.u32 (!%p192_p9), %s1935_s22, 9 }
  0x10   : > { %269 = vperm.xlu0 (!%p192_p9), %1792, %v251_v9   ;;  %279 = vperm.xlu1 (!%p192_p9), %1793, %v253_v12   ;;  %v256_v18 = vld [vmem:[%s2206_s2 + $0x28] sm:$0xff] (!%p192_p9)  ;;  %v258_v20 = vld [vmem:[%s2206_s2 + $0x38] sm:$0xff] (!%p192_p9)  ;;  %v259_v21 = vld [vmem:[%s2206_s2 + $0x40] sm:$0xff] (!%p192_p9)  ;;  %s1685_s13 = sshll.u32 (!%p192_p9), %s216_s12, 5  ;;  %s2162_s25 = scalar_lea.hbm (!%p192_p9), %s2209_s5, %s1751_s14 }
  0x11   : > { %v1796_v22 = vld [vmem:[%s2205_s1 + $0x10] sm:$0xff] (!%p192_p9)   ;;  %v260_v23 = vld [vmem:[%s2206_s2 + $0x48] sm:$0xff] (!%p192_p9)  ;;  %v262_v25 = vld [vmem:[%s2206_s2 + $0x58] sm:$0xff] (!%p192_p9)  ;;  %s218_s15 = scalar_lea.vmem (!%p192_p9), [#allocation2], %s1685_s13  ;;  %s1608_s22 = scalar_lea.sflag (!%p192_p9), [#allocation3], %s216_s12 }
  0x12   : > { %v261_v24 = vld [vmem:[%s2206_s2 + $0x50] sm:$0xff] (!%p192_p9)  ;;  %v263_v26 = vld [vmem:[%s2206_s2 + $0x60] sm:$0xff] (!%p192_p9)  ;;  %v1797_v27 = vld [vmem:[%s2205_s1 + $0x18] sm:$0xff] (!%p192_p9)   ;;  %s1622_s16 = sshll.u32 (!%p192_p9), %s218_s15, 4  ;;  %s2164_s16 = int_to_ptr.vmem [resolvable:$true] %s1622_s16 }
  0x13   : > { %v264_v28 = vld [vmem:[%s2206_s2 + $0x68] sm:$0xff] (!%p192_p9)  ;;  %v265_v29 = vld [vmem:[%s2206_s2 + $0x70] sm:$0xff] (!%p192_p9)  ;;  %v266_v30 = vld [vmem:[%s2206_s2 + $0x78] sm:$0xff] (!%p192_p9)  ;;  %s1818_s26 = scalar_lea.vmem (!%p192_p9), %s2164_s16, 512 }
  0x14   : > { %274 = vperm.xlu0 (!%p192_p9), %1792, %v252_v14   ;;  %284 = vperm.xlu1 (!%p192_p9), %1793, %v254_v15   ;;  %v1798_v31 = vld [vmem:[%s2205_s1 + $0x20] sm:$0xff] (!%p192_p9)   ;;  %v1799_v32 = vld [vmem:[%s2205_s1 + $0x28] sm:$0xff] (!%p192_p9)   ;;  %v1800_v33 = vld [vmem:[%s2205_s1 + $0x30] sm:$0xff] (!%p192_p9)   ;;  %p1819_p11 = scmp.ne.s32.totalorder (!%p192_p9), %s2164_s16, %s1818_s26 }
  0x15   : > { %s2217_s30 = smov (!%p220_p10, %s1686_s30), 7  ;;  %v1801_v34 = vld [vmem:[%s2205_s1 + $0x38] sm:$0xff]  }
  0x16   : > { %s1687_s6 = sshll.u32 %s2217_s30, 3  ;;  %p1820_p12 = pnand %p1819_p11, %p1952_p5 }
  0x17   : > { %s223_s9 = scalar_lea.vmem %s2204_s0, %s1687_s6  ;;  %s1883_s30 = smov [#allocation2]  }
  0x18   : > { %v228_v1 = vld [vmem:[%s223_s9 + $0x8] sm:$0xff]  ;;  %v230_v2 = vld [vmem:[%s223_s9 + $0x18] sm:$0xff]  ;;  %v227_v3 = vld [vmem:[%s223_s9] sm:$0xff]  ;;  %289 = vperm.xlu0 %1792, %v255_v16   ;;  %294 = vperm.xlu1 %1793, %v256_v18   ;;  %p1821_p13 = pneg %p1820_p12  ;;  %s1822_s6 = sshll.u32 %s1883_s30, 4  ;;  %s1823_s6 = int_to_ptr.vmem [resolvable:$false] %s1822_s6 }
  0x19   : > { %v232_v4 = vpack.c.bf16 %v228_v1, %v228_v1  ;;  %v234_v5 = vpack.c.bf16 %v230_v2, %v230_v2  ;;  %v231_v6 = vpack.c.bf16 %v227_v3, %v227_v3  ;;  %v229_v7 = vld [vmem:[%s223_s9 + $0x10] sm:$0xff]  ;;  %s1824_s7 = scalar_lea.vmem %s1823_s6, 1024  ;;  %p1825_p0 = scmp.lt.s32.totalorder %s2164_s16, %s1823_s6 }
  0x1a   : > { %v233_v8 = vpack.c.bf16 %v229_v7, %v229_v7  ;;  %p1826_p1 = scmp.lt.s32.totalorder %s1824_s7, %s1818_s26 }
  0x1b   : > { %1696 = vmatprep.subr.msk.bf16.mxu0 %vm412_vm0, %v232_v4  ;;  %1705 = vmatprep.subr.msk.bf16.mxu1 %vm412_vm0, %v234_v5  ;;  %v414_v10 = vsel %vm412_vm0, %v231_v6, 0 }
  0x1c   : > { %426 = vmatpush1.bf16.msra.mxu0 %v414_v10  ;;  %v420_v13 = vsel %vm412_vm0, %v233_v8, 0  ;;  %299 = vperm.xlu0 %1792, %v257_v19   ;;  %p1827_p2 = por %p1826_p1, %p1825_p0 }
  0x1d   : > { %539 = vmatpush1.bf16.msra.mxu1 %v420_v13  ;;  %304 = vperm.xlu1 %1793, %v258_v20  }
  0x1e   : > { %p1828_p3 = pnand %p1827_p2, %p1821_p13 }
  0x1f   : > { %1697 = vmatmul.mubr.msk.bf16.vlgmr.msra.gmra.mrb[0].mxu0 %vm387_vm1, %v1794_v11 }
  0x20   : > { %1706 = vmatmul.mubr.msk.bf16.vlgmr.msra.gmra.mrb[0].mxu1 %vm387_vm1, %v1794_v11  ;;  %467 = vmatprep.mubr.bf16.mxu0 %v1882_v0 }
  0x21   : > { %580 = vmatprep.mubr.bf16.mxu1 %v1882_v0  ;;  %309 = vperm.xlu0 %1792, %v259_v21  }
  0x22   : > { %314 = vperm.xlu1 %1793, %v260_v23  }
  0x25   : > { %319 = vperm.xlu0 %1792, %v261_v24  }
  0x26   : > { %324 = vperm.xlu1 %1793, %v262_v25  }
  0x27   : > { %1698 = vmatmul.mubr.msk.bf16.gmra.mrb[4].mxu0 %vm387_vm1, %v1795_v17 }
  0x28   : > { %1707 = vmatmul.mubr.msk.bf16.gmra.mrb[4].mxu1 %vm387_vm1, %v1795_v17  ;;  %477 = vmatprep.mubr.bf16.mxu0 %v1882_v0 }
  0x29   : > { %590 = vmatprep.mubr.bf16.mxu1 %v1882_v0  ;;  %329 = vperm.xlu0 %1792, %v263_v26  }
  0x2a   : > { %334 = vperm.xlu1 %1793, %v264_v28  }
  0x2d   : > { %339 = vperm.xlu0 %1792, %v265_v29  }
  0x2e   : > { %344 = vperm.xlu1 %1793, %v266_v30  }
  0x2f   : > { %1699 = vmatmul.mubr.msk.bf16.gmra.mrb[8].mxu0 %vm387_vm1, %v1796_v22 }
  0x30   : > { %1708 = vmatmul.mubr.msk.bf16.gmra.mrb[8].mxu1 %vm387_vm1, %v1796_v22  ;;  %487 = vmatprep.mubr.bf16.mxu0 %v1882_v0 }
  0x31   : > { %600 = vmatprep.mubr.bf16.mxu1 %v1882_v0 }
  0x37   : > { %1700 = vmatmul.mubr.msk.bf16.gmra.mrb[12].mxu0 %vm387_vm1, %v1797_v27 }
  0x38   : > { %1709 = vmatmul.mubr.msk.bf16.gmra.mrb[12].mxu1 %vm387_vm1, %v1797_v27  ;;  %497 = vmatprep.mubr.bf16.mxu0 %v1882_v0 }
  0x39   : > { %610 = vmatprep.mubr.bf16.mxu1 %v1882_v0 }
  0x3f   : > { %1701 = vmatmul.mubr.msk.bf16.gmra.mrb[16].mxu0 %vm387_vm1, %v1798_v31 }
  0x40   : > { %1710 = vmatmul.mubr.msk.bf16.gmra.mrb[16].mxu1 %vm387_vm1, %v1798_v31  ;;  %507 = vmatprep.mubr.bf16.mxu0 %v1882_v0 }
  0x41   : > { %620 = vmatprep.mubr.bf16.mxu1 %v1882_v0 }
  0x47   : > { %1702 = vmatmul.mubr.msk.bf16.gmra.mrb[20].mxu0 %vm387_vm1, %v1799_v32 }
  0x48   : > { %1711 = vmatmul.mubr.msk.bf16.gmra.mrb[20].mxu1 %vm387_vm1, %v1799_v32  ;;  %517 = vmatprep.mubr.bf16.mxu0 %v1882_v0 }
  0x49   : > { %630 = vmatprep.mubr.bf16.mxu1 %v1882_v0 }
  0x4f   : > { %1703 = vmatmul.mubr.msk.bf16.gmra.mrb[24].mxu0 %vm387_vm1, %v1800_v33 }
  0x50   : > { %1712 = vmatmul.mubr.msk.bf16.gmra.mrb[24].mxu1 %vm387_vm1, %v1800_v33  ;;  %527 = vmatprep.mubr.bf16.mxu0 %v1882_v0 }
  0x51   : > { %640 = vmatprep.mubr.bf16.mxu1 %v1882_v0 }
  0x57   : > { %1704 = vmatmul.mubr.msk.bf16.gmra.mrb[28].mxu0 %vm387_vm1, %v1801_v34 }
  0x58   : > { %1713 = vmatmul.mubr.msk.bf16.gmra.mrb[28].mxu1 %vm387_vm1, %v1801_v34  ;;  %843 = vmatprep.mubr.bf16.mxu0 %v1882_v0 }
  0x59   : > { %956 = vmatprep.mubr.bf16.mxu1 %v1882_v0 }
  0x8f   : > { %v270_v35 = vpop.permute.xlu0 %269  ;;  %v280_v36 = vpop.permute.xlu1 %279 }
  0x93   : > { %v275_v37 = vpop.permute.xlu0 %274  ;;  %v285_v63 = vpop.permute.xlu1 %284 }
  0x97   : > { %v290_v26 = vpop.permute.xlu0 %289  ;;  %v295_v30 = vpop.permute.xlu1 %294 }
  0xf2   : > { %v459_v38 = vpop.f32.mrb[0].mxu0 }
  0xf3   : > { %v460_v39 = vadd.f32 %v459_v38, %v270_v35  ;;  %v572_v40 = vpop.f32.mrb[0].mxu1  ;;  %v461_v41 = vpop.f32.mrb[1].mxu0 }
  0xf4   : > { %v573_v42 = vadd.f32 %v572_v40, %v270_v35  ;;  %v462_v43 = vadd.f32 %v461_v41, %v270_v35  ;;  %v574_v44 = vpop.f32.mrb[1].mxu1  ;;  %v463_v45 = vpop.f32.mrb[2].mxu0 }
  0xf5   : > { %v575_v46 = vadd.f32 %v574_v44, %v270_v35  ;;  %v464_v47 = vadd.f32 %v463_v45, %v275_v37  ;;  %v576_v48 = vpop.f32.mrb[2].mxu1  ;;  %v465_v49 = vpop.f32.mrb[3].mxu0  ;;  %v651_v53 = vmax.f32 %v460_v39, 0.0 }
  0xf6   : > { %v577_v50 = vadd.f32 %v576_v48, %v275_v37  ;;  %v466_v51 = vadd.f32 %v465_v49, %v275_v37  ;;  %v578_v52 = vpop.f32.mrb[3].mxu1  ;;  %v653_v56 = vmax.f32 %v573_v42, 0.0  ;;  %v652_v57 = vmax.f32 %v462_v43, 0.0 }
  0xf7   : > { %v655_v54 = vmax.f32 %v464_v47, 0.0  ;;  %v579_v55 = vadd.f32 %v578_v52, %v275_v37  ;;  %v654_v60 = vmax.f32 %v575_v46, 0.0 }
  0xf8   : > { %v657_v58 = vmax.f32 %v577_v50, 0.0  ;;  %v656_v59 = vmax.f32 %v466_v51, 0.0 }
  0xf9   : > { %v715_v61 = vpack.c.bf16 %v655_v54, %v651_v53  ;;  %v658_v62 = vmax.f32 %v579_v55, 0.0 }
  0xfa   : > { %v717_v1 = vpack.c.bf16 %v657_v58, %v653_v56  ;;  %v716_v2 = vpack.c.bf16 %v656_v59, %v652_v57  ;;  %v469_v3 = vpop.f32.mrb[4].mxu0  ;;  %v300_v56 = vpop.permute.xlu0 %299 }
  0xfb   : > { %v718_v4 = vpack.c.bf16 %v658_v62, %v654_v60  ;;  %v470_v5 = vadd.f32 %v469_v3, %v280_v36  ;;  %v582_v6 = vpop.f32.mrb[4].mxu1  ;;  %v471_v7 = vpop.f32.mrb[5].mxu0 }
  0xfc   : > { %v583_v8 = vadd.f32 %v582_v6, %v280_v36  ;;  %v472_v9 = vadd.f32 %v471_v7, %v280_v36  ;;  %v584_v10 = vpop.f32.mrb[5].mxu1  ;;  %v473_v11 = vpop.f32.mrb[6].mxu0  ;;  %811 = vmatprep.subr.bf16.mxu0 %v716_v2 }
  0xfd   : > { %v585_v12 = vadd.f32 %v584_v10, %v280_v36  ;;  %v474_v13 = vadd.f32 %v473_v11, %v285_v63  ;;  %v586_v14 = vpop.f32.mrb[6].mxu1  ;;  %924 = vmatprep.subr.bf16.mxu1 %v718_v4  ;;  %v475_v15 = vpop.f32.mrb[7].mxu0  ;;  %812 = vmatpush1.bf16.msra.mxu0 %v715_v61  ;;  %v659_v19 = vmax.f32 %v470_v5, 0.0 }
  0xfe   : > { %v587_v16 = vadd.f32 %v586_v14, %v285_v63  ;;  %v476_v17 = vadd.f32 %v475_v15, %v285_v63  ;;  %v588_v18 = vpop.f32.mrb[7].mxu1  ;;  %925 = vmatpush1.bf16.msra.mxu1 %v717_v1  ;;  %v661_v22 = vmax.f32 %v583_v8, 0.0  ;;  %v660_v23 = vmax.f32 %v472_v9, 0.0  ;;  %v305_v60 = vpop.permute.xlu1 %304 }
  0xff   : > { %v663_v20 = vmax.f32 %v474_v13, 0.0  ;;  %v589_v21 = vadd.f32 %v588_v18, %v285_v63  ;;  %v662_v27 = vmax.f32 %v585_v12, 0.0 }
 0x100   : > { %v665_v24 = vmax.f32 %v587_v16, 0.0  ;;  %v664_v25 = vmax.f32 %v476_v17, 0.0 }
 0x101   : > { %v719_v28 = vpack.c.bf16 %v663_v20, %v659_v19  ;;  %v666_v29 = vmax.f32 %v589_v21, 0.0 }
 0x102   : > { %v721_v31 = vpack.c.bf16 %v665_v24, %v661_v22  ;;  %v720_v32 = vpack.c.bf16 %v664_v25, %v660_v23  ;;  %v479_v33 = vpop.f32.mrb[8].mxu0  ;;  %v310_v23 = vpop.permute.xlu0 %309 }
 0x103   : > { %v722_v34 = vpack.c.bf16 %v666_v29, %v662_v27  ;;  %v480_v35 = vadd.f32 %v479_v33, %v290_v26  ;;  %v592_v36 = vpop.f32.mrb[8].mxu1  ;;  %v481_v37 = vpop.f32.mrb[9].mxu0 }
 0x104   : > { %v593_v38 = vadd.f32 %v592_v36, %v290_v26  ;;  %v482_v39 = vadd.f32 %v481_v37, %v290_v26  ;;  %v594_v40 = vpop.f32.mrb[9].mxu1  ;;  %v483_v41 = vpop.f32.mrb[10].mxu0  ;;  %813 = vmatprep.subr.bf16.mxu0 %v720_v32 }
 0x105   : > { %v595_v42 = vadd.f32 %v594_v40, %v290_v26  ;;  %v484_v43 = vadd.f32 %v483_v41, %v295_v30  ;;  %v596_v44 = vpop.f32.mrb[10].mxu1  ;;  %926 = vmatprep.subr.bf16.mxu1 %v722_v34  ;;  %v485_v45 = vpop.f32.mrb[11].mxu0  ;;  %814 = vmatpush1.bf16.msra.mxu0 %v719_v28  ;;  %v667_v49 = vmax.f32 %v480_v35, 0.0 }
 0x106   : > { %v597_v46 = vadd.f32 %v596_v44, %v295_v30  ;;  %v486_v47 = vadd.f32 %v485_v45, %v295_v30  ;;  %v598_v48 = vpop.f32.mrb[11].mxu1  ;;  %927 = vmatpush1.bf16.msra.mxu1 %v721_v31  ;;  %v669_v52 = vmax.f32 %v593_v38, 0.0  ;;  %v668_v53 = vmax.f32 %v482_v39, 0.0  ;;  %v315_v27 = vpop.permute.xlu1 %314 }
 0x107   : > { %v671_v50 = vmax.f32 %v484_v43, 0.0  ;;  %v599_v51 = vadd.f32 %v598_v48, %v295_v30  ;;  %v670_v57 = vmax.f32 %v595_v42, 0.0 }
 0x108   : > { %v673_v54 = vmax.f32 %v597_v46, 0.0  ;;  %v672_v55 = vmax.f32 %v486_v47, 0.0 }
 0x109   : > { %v723_v58 = vpack.c.bf16 %v671_v50, %v667_v49  ;;  %v674_v59 = vmax.f32 %v599_v51, 0.0 }
 0x10a   : > { %v725_v61 = vpack.c.bf16 %v673_v54, %v669_v52  ;;  %v724_v62 = vpack.c.bf16 %v672_v55, %v668_v53  ;;  %v489_v63 = vpop.f32.mrb[12].mxu0  ;;  %v320_v53 = vpop.permute.xlu0 %319 }
 0x10b   : > { %v726_v1 = vpack.c.bf16 %v674_v59, %v670_v57  ;;  %v490_v2 = vadd.f32 %v489_v63, %v300_v56  ;;  %v602_v3 = vpop.f32.mrb[12].mxu1  ;;  %v491_v4 = vpop.f32.mrb[13].mxu0 }
 0x10c   : > { %v603_v5 = vadd.f32 %v602_v3, %v300_v56  ;;  %v492_v6 = vadd.f32 %v491_v4, %v300_v56  ;;  %v604_v7 = vpop.f32.mrb[13].mxu1  ;;  %v493_v8 = vpop.f32.mrb[14].mxu0  ;;  %815 = vmatprep.subr.bf16.mxu0 %v724_v62 }
 0x10d   : > { %v605_v9 = vadd.f32 %v604_v7, %v300_v56  ;;  %v494_v10 = vadd.f32 %v493_v8, %v305_v60  ;;  %v606_v11 = vpop.f32.mrb[14].mxu1  ;;  %928 = vmatprep.subr.bf16.mxu1 %v726_v1  ;;  %v495_v12 = vpop.f32.mrb[15].mxu0  ;;  %816 = vmatpush1.bf16.msra.mxu0 %v723_v58  ;;  %v675_v16 = vmax.f32 %v490_v2, 0.0 }
 0x10e   : > { %v607_v13 = vadd.f32 %v606_v11, %v305_v60  ;;  %v496_v14 = vadd.f32 %v495_v12, %v305_v60  ;;  %v608_v15 = vpop.f32.mrb[15].mxu1  ;;  %929 = vmatpush1.bf16.msra.mxu1 %v725_v61  ;;  %v677_v19 = vmax.f32 %v603_v5, 0.0  ;;  %v676_v20 = vmax.f32 %v492_v6, 0.0  ;;  %v325_v57 = vpop.permute.xlu1 %324 }
 0x10f   : > { %v679_v17 = vmax.f32 %v494_v10, 0.0  ;;  %v609_v18 = vadd.f32 %v608_v15, %v305_v60  ;;  %v678_v24 = vmax.f32 %v605_v9, 0.0 }
 0x110   : > { %v681_v21 = vmax.f32 %v607_v13, 0.0  ;;  %v680_v22 = vmax.f32 %v496_v14, 0.0 }
 0x111   : > { %v727_v25 = vpack.c.bf16 %v679_v17, %v675_v16  ;;  %v682_v26 = vmax.f32 %v609_v18, 0.0 }
 0x112   : > { %v729_v28 = vpack.c.bf16 %v681_v21, %v677_v19  ;;  %v728_v29 = vpack.c.bf16 %v680_v22, %v676_v20  ;;  %v499_v30 = vpop.f32.mrb[16].mxu0  ;;  %v330_v20 = vpop.permute.xlu0 %329 }
 0x113   : > { %v730_v31 = vpack.c.bf16 %v682_v26, %v678_v24  ;;  %v500_v32 = vadd.f32 %v499_v30, %v310_v23  ;;  %v612_v33 = vpop.f32.mrb[16].mxu1  ;;  %v501_v34 = vpop.f32.mrb[17].mxu0 }
 0x114   : > { %v613_v35 = vadd.f32 %v612_v33, %v310_v23  ;;  %v502_v36 = vadd.f32 %v501_v34, %v310_v23  ;;  %v614_v37 = vpop.f32.mrb[17].mxu1  ;;  %v503_v38 = vpop.f32.mrb[18].mxu0  ;;  %817 = vmatprep.subr.bf16.mxu0 %v728_v29 }
 0x115   : > { %v615_v39 = vadd.f32 %v614_v37, %v310_v23  ;;  %v504_v40 = vadd.f32 %v503_v38, %v315_v27  ;;  %v616_v41 = vpop.f32.mrb[18].mxu1  ;;  %930 = vmatprep.subr.bf16.mxu1 %v730_v31  ;;  %v505_v42 = vpop.f32.mrb[19].mxu0  ;;  %818 = vmatpush1.bf16.msra.mxu0 %v727_v25  ;;  %v683_v46 = vmax.f32 %v500_v32, 0.0 }
 0x116   : > { %v617_v43 = vadd.f32 %v616_v41, %v315_v27  ;;  %v506_v44 = vadd.f32 %v505_v42, %v315_v27  ;;  %v618_v45 = vpop.f32.mrb[19].mxu1  ;;  %931 = vmatpush1.bf16.msra.mxu1 %v729_v28  ;;  %v685_v49 = vmax.f32 %v613_v35, 0.0  ;;  %v684_v50 = vmax.f32 %v502_v36, 0.0  ;;  %v335_v24 = vpop.permute.xlu1 %334 }
 0x117   : > { %v687_v47 = vmax.f32 %v504_v40, 0.0  ;;  %v619_v48 = vadd.f32 %v618_v45, %v315_v27  ;;  %v686_v54 = vmax.f32 %v615_v39, 0.0 }
 0x118   : > { %v689_v51 = vmax.f32 %v617_v43, 0.0  ;;  %v688_v52 = vmax.f32 %v506_v44, 0.0 }
 0x119   : > { %v731_v55 = vpack.c.bf16 %v687_v47, %v683_v46  ;;  %v690_v56 = vmax.f32 %v619_v48, 0.0 }
 0x11a   : > { %v733_v58 = vpack.c.bf16 %v689_v51, %v685_v49  ;;  %v732_v59 = vpack.c.bf16 %v688_v52, %v684_v50  ;;  %v509_v60 = vpop.f32.mrb[20].mxu0  ;;  %v340_v50 = vpop.permute.xlu0 %339 }
 0x11b   : > { %v734_v61 = vpack.c.bf16 %v690_v56, %v686_v54  ;;  %v510_v62 = vadd.f32 %v509_v60, %v320_v53  ;;  %v622_v63 = vpop.f32.mrb[20].mxu1  ;;  %v511_v1 = vpop.f32.mrb[21].mxu0 }
 0x11c   : > { %v623_v2 = vadd.f32 %v622_v63, %v320_v53  ;;  %v512_v3 = vadd.f32 %v511_v1, %v320_v53  ;;  %v624_v4 = vpop.f32.mrb[21].mxu1  ;;  %v513_v5 = vpop.f32.mrb[22].mxu0  ;;  %819 = vmatprep.subr.bf16.mxu0 %v732_v59 }
 0x11d   : > { %v625_v6 = vadd.f32 %v624_v4, %v320_v53  ;;  %v514_v7 = vadd.f32 %v513_v5, %v325_v57  ;;  %v626_v8 = vpop.f32.mrb[22].mxu1  ;;  %932 = vmatprep.subr.bf16.mxu1 %v734_v61  ;;  %v515_v9 = vpop.f32.mrb[23].mxu0  ;;  %820 = vmatpush1.bf16.msra.mxu0 %v731_v55  ;;  %v691_v13 = vmax.f32 %v510_v62, 0.0 }
 0x11e   : > { %v627_v10 = vadd.f32 %v626_v8, %v325_v57  ;;  %v516_v11 = vadd.f32 %v515_v9, %v325_v57  ;;  %v628_v12 = vpop.f32.mrb[23].mxu1  ;;  %933 = vmatpush1.bf16.msra.mxu1 %v733_v58  ;;  %v693_v16 = vmax.f32 %v623_v2, 0.0  ;;  %v692_v17 = vmax.f32 %v512_v3, 0.0  ;;  %v345_v54 = vpop.permute.xlu1 %344 }
 0x11f   : > { %v695_v14 = vmax.f32 %v514_v7, 0.0  ;;  %v629_v15 = vadd.f32 %v628_v12, %v325_v57  ;;  %v694_v21 = vmax.f32 %v625_v6, 0.0 }
 0x120   : > { %v697_v18 = vmax.f32 %v627_v10, 0.0  ;;  %v696_v19 = vmax.f32 %v516_v11, 0.0 }
 0x121   : > { %v735_v22 = vpack.c.bf16 %v695_v14, %v691_v13  ;;  %v698_v23 = vmax.f32 %v629_v15, 0.0 }
 0x122   : > { %v737_v25 = vpack.c.bf16 %v697_v18, %v693_v16  ;;  %v736_v26 = vpack.c.bf16 %v696_v19, %v692_v17  ;;  %v519_v27 = vpop.f32.mrb[24].mxu0 }
 0x123   : > { %v738_v28 = vpack.c.bf16 %v698_v23, %v694_v21  ;;  %v520_v29 = vadd.f32 %v519_v27, %v330_v20  ;;  %v632_v30 = vpop.f32.mrb[24].mxu1  ;;  %v521_v31 = vpop.f32.mrb[25].mxu0  ;;  %v1802_v23 = vld [vmem:[%s2207_s3] sm:$0xff]  }
 0x124   : > { %v633_v32 = vadd.f32 %v632_v30, %v330_v20  ;;  %v522_v33 = vadd.f32 %v521_v31, %v330_v20  ;;  %v634_v34 = vpop.f32.mrb[25].mxu1  ;;  %v523_v35 = vpop.f32.mrb[26].mxu0  ;;  %821 = vmatprep.subr.bf16.mxu0 %v736_v26  ;;  %v1805_v26 = vld [vmem:[%s2207_s3 + $0x18] sm:$0xff]   ;;  %v1806_v27 = vld [vmem:[%s2207_s3 + $0x20] sm:$0xff]  }
 0x125   : > { %v635_v36 = vadd.f32 %v634_v34, %v330_v20  ;;  %v524_v37 = vadd.f32 %v523_v35, %v335_v24  ;;  %v636_v38 = vpop.f32.mrb[26].mxu1  ;;  %934 = vmatprep.subr.bf16.mxu1 %v738_v28  ;;  %v525_v39 = vpop.f32.mrb[27].mxu0  ;;  %822 = vmatpush1.bf16.msra.mxu0 %v735_v22  ;;  %v699_v43 = vmax.f32 %v520_v29, 0.0  ;;  %v1807_v28 = vld [vmem:[%s2207_s3 + $0x28] sm:$0xff]   ;;  %v1808_v29 = vld [vmem:[%s2207_s3 + $0x30] sm:$0xff]   ;;  %v1809_v30 = vld [vmem:[%s2207_s3 + $0x38] sm:$0xff]  }
 0x126   : > { %v637_v40 = vadd.f32 %v636_v38, %v335_v24  ;;  %v526_v41 = vadd.f32 %v525_v39, %v335_v24  ;;  %v638_v42 = vpop.f32.mrb[27].mxu1  ;;  %935 = vmatpush1.bf16.msra.mxu1 %v737_v25  ;;  %v701_v46 = vmax.f32 %v633_v32, 0.0  ;;  %v700_v47 = vmax.f32 %v522_v33, 0.0  ;;  %v1804_v25 = vld [vmem:[%s2207_s3 + $0x10] sm:$0xff]  }
 0x127   : > { %v703_v44 = vmax.f32 %v524_v37, 0.0  ;;  %v639_v45 = vadd.f32 %v638_v42, %v335_v24  ;;  %v702_v51 = vmax.f32 %v635_v36, 0.0  ;;  %v1803_v24 = vld [vmem:[%s2207_s3 + $0x8] sm:$0xff]  }
 0x128   : > { %v705_v48 = vmax.f32 %v637_v40, 0.0  ;;  %v704_v49 = vmax.f32 %v526_v41, 0.0 }
 0x129   : > { %v739_v52 = vpack.c.bf16 %v703_v44, %v699_v43  ;;  %v706_v53 = vmax.f32 %v639_v45, 0.0 }
 0x12a   : > { %v741_v55 = vpack.c.bf16 %v705_v48, %v701_v46  ;;  %v740_v56 = vpack.c.bf16 %v704_v49, %v700_v47  ;;  %v529_v57 = vpop.f32.mrb[28].mxu0 }
 0x12b   : > { %v742_v58 = vpack.c.bf16 %v706_v53, %v702_v51  ;;  %v530_v59 = vadd.f32 %v529_v57, %v340_v50  ;;  %v642_v60 = vpop.f32.mrb[28].mxu1  ;;  %v531_v61 = vpop.f32.mrb[29].mxu0 }
 0x12c   : > { %v643_v62 = vadd.f32 %v642_v60, %v340_v50  ;;  %v532_v63 = vadd.f32 %v531_v61, %v340_v50  ;;  %v644_v1 = vpop.f32.mrb[29].mxu1  ;;  %v533_v2 = vpop.f32.mrb[30].mxu0  ;;  %823 = vmatprep.subr.bf16.mxu0 %v740_v56 }
 0x12d   : > { %v645_v3 = vadd.f32 %v644_v1, %v340_v50  ;;  %v534_v4 = vadd.f32 %v533_v2, %v345_v54  ;;  %v646_v5 = vpop.f32.mrb[30].mxu1  ;;  %936 = vmatprep.subr.bf16.mxu1 %v742_v58  ;;  %v535_v6 = vpop.f32.mrb[31].mxu0  ;;  %824 = vmatpush1.bf16.msra.mxu0 %v739_v52  ;;  %v707_v10 = vmax.f32 %v530_v59, 0.0 }
 0x12e   : > { %v647_v7 = vadd.f32 %v646_v5, %v345_v54  ;;  %v536_v8 = vadd.f32 %v535_v6, %v345_v54  ;;  %v648_v9 = vpop.f32.mrb[31].mxu1  ;;  %937 = vmatpush1.bf16.msra.mxu1 %v741_v55  ;;  %v709_v13 = vmax.f32 %v643_v62, 0.0  ;;  %v708_v14 = vmax.f32 %v532_v63, 0.0 }
 0x12f   : > { %v711_v11 = vmax.f32 %v534_v4, 0.0  ;;  %v649_v12 = vadd.f32 %v648_v9, %v345_v54  ;;  %v710_v17 = vmax.f32 %v645_v3, 0.0 }
 0x130   : > { %v713_v15 = vmax.f32 %v647_v7, 0.0  ;;  %v712_v16 = vmax.f32 %v536_v8, 0.0 }
 0x131   : > { %v743_v18 = vpack.c.bf16 %v711_v11, %v707_v10  ;;  %v714_v19 = vmax.f32 %v649_v12, 0.0 }
 0x132   : > { %v745_v20 = vpack.c.bf16 %v713_v15, %v709_v13  ;;  %v744_v21 = vpack.c.bf16 %v712_v16, %v708_v14 }
 0x133   : > { %v746_v22 = vpack.c.bf16 %v714_v19, %v710_v17 }
 0x134   : > { %825 = vmatprep.subr.bf16.mxu0 %v744_v21 }
 0x135   : > { %938 = vmatprep.subr.bf16.mxu1 %v746_v22  ;;  %826 = vmatpush1.bf16.msra.mxu0 %v743_v18 }
 0x136   : > { %939 = vmatpush1.bf16.msra.mxu1 %v745_v20 }
 0x138   : > { %844 = vmatmul.mubr.bf16.vlgmr.msra.gmra.mrb[32].mxu0 %v1802_v23 }
 0x139   : > { %957 = vmatmul.mubr.bf16.vlgmr.msra.gmra.mrb[32].mxu1 %v1802_v23  ;;  %853 = vmatprep.mubr.bf16.mxu0 %v1882_v0 }
 0x13a   : > { %966 = vmatprep.mubr.bf16.mxu1 %v1882_v0 }
 0x140   : > { %854 = vmatmul.mubr.bf16.gmra.mrb[36].mxu0 %v1803_v24 }
 0x141   : > { %967 = vmatmul.mubr.bf16.gmra.mrb[36].mxu1 %v1803_v24  ;;  %863 = vmatprep.mubr.bf16.mxu0 %v1882_v0 }
 0x142   : > { %976 = vmatprep.mubr.bf16.mxu1 %v1882_v0 }
 0x148   : > { %864 = vmatmul.mubr.bf16.gmra.mrb[40].mxu0 %v1804_v25 }
 0x149   : > { %977 = vmatmul.mubr.bf16.gmra.mrb[40].mxu1 %v1804_v25  ;;  %873 = vmatprep.mubr.bf16.mxu0 %v1882_v0 }
 0x14a   : > { %986 = vmatprep.mubr.bf16.mxu1 %v1882_v0 }
 0x150   : > { %874 = vmatmul.mubr.bf16.gmra.mrb[44].mxu0 %v1805_v26 }
 0x151   : > { %987 = vmatmul.mubr.bf16.gmra.mrb[44].mxu1 %v1805_v26  ;;  %883 = vmatprep.mubr.bf16.mxu0 %v1882_v0 }
 0x152   : > { %996 = vmatprep.mubr.bf16.mxu1 %v1882_v0 }
 0x158   : > { %884 = vmatmul.mubr.bf16.gmra.mrb[48].mxu0 %v1806_v27 }
 0x159   : > { %997 = vmatmul.mubr.bf16.gmra.mrb[48].mxu1 %v1806_v27  ;;  %893 = vmatprep.mubr.bf16.mxu0 %v1882_v0 }
 0x15a   : > { %1006 = vmatprep.mubr.bf16.mxu1 %v1882_v0 }
 0x160   : > { %894 = vmatmul.mubr.bf16.gmra.mrb[52].mxu0 %v1807_v28 }
 0x161   : > { %1007 = vmatmul.mubr.bf16.gmra.mrb[52].mxu1 %v1807_v28  ;;  %903 = vmatprep.mubr.bf16.mxu0 %v1882_v0 }
 0x162   : > { %1016 = vmatprep.mubr.bf16.mxu1 %v1882_v0 }
 0x168   : > { %904 = vmatmul.mubr.bf16.gmra.mrb[56].mxu0 %v1808_v29 }
 0x169   : > { %1017 = vmatmul.mubr.bf16.gmra.mrb[56].mxu1 %v1808_v29  ;;  %913 = vmatprep.mubr.bf16.mxu0 %v1882_v0 }
 0x16a   : > { %1026 = vmatprep.mubr.bf16.mxu1 %v1882_v0 }
 0x170   : > { %914 = vmatmul.mubr.bf16.gmra.mrb[60].mxu0 %v1809_v30 }
 0x171   : > { %1027 = vmatmul.mubr.bf16.gmra.mrb[60].mxu1 %v1809_v30  ;;  %1230 = vmatprep.mubr.bf16.mxu0 %v1882_v0 }
 0x172   : > { %1343 = vmatprep.mubr.bf16.mxu1 %v1882_v0 }
 0x20b   : > { %v845_v31 = vpop.f32.mrb[32].mxu0 }
 0x20c   : > { %v958_v32 = vpop.f32.mrb[32].mxu1  ;;  %v847_v33 = vpop.f32.mrb[33].mxu0  ;;  %v1037_v36 = vmax.f32 %v845_v31, 0.0 }
 0x20d   : > { %v960_v34 = vpop.f32.mrb[33].mxu1  ;;  %v849_v35 = vpop.f32.mrb[34].mxu0  ;;  %v1039_v40 = vmax.f32 %v958_v32, 0.0  ;;  %v1038_v41 = vmax.f32 %v847_v33, 0.0 }
 0x20e   : > { %v1041_v37 = vmax.f32 %v849_v35, 0.0  ;;  %v962_v38 = vpop.f32.mrb[34].mxu1  ;;  %v851_v39 = vpop.f32.mrb[35].mxu0  ;;  %v1040_v45 = vmax.f32 %v960_v34, 0.0 }
 0x20f   : > { %v1043_v42 = vmax.f32 %v962_v38, 0.0  ;;  %v1042_v43 = vmax.f32 %v851_v39, 0.0  ;;  %v964_v44 = vpop.f32.mrb[35].mxu1 }
 0x210   : > { %v1101_v46 = vpack.c.bf16 %v1041_v37, %v1037_v36  ;;  %v1044_v47 = vmax.f32 %v964_v44, 0.0 }
 0x211   : > { %v1103_v48 = vpack.c.bf16 %v1043_v42, %v1039_v40  ;;  %v1102_v49 = vpack.c.bf16 %v1042_v43, %v1038_v41 }
 0x212   : > { %v1104_v50 = vpack.c.bf16 %v1044_v47, %v1040_v45 }
 0x213   : > { %v855_v51 = vpop.f32.mrb[36].mxu0  ;;  %1198 = vmatprep.subr.bf16.mxu0 %v1102_v49 }
 0x214   : > { %v968_v52 = vpop.f32.mrb[36].mxu1  ;;  %1311 = vmatprep.subr.bf16.mxu1 %v1104_v50  ;;  %v857_v53 = vpop.f32.mrb[37].mxu0  ;;  %1199 = vmatpush1.bf16.msra.mxu0 %v1101_v46  ;;  %v1045_v56 = vmax.f32 %v855_v51, 0.0 }
 0x215   : > { %v970_v54 = vpop.f32.mrb[37].mxu1  ;;  %1312 = vmatpush1.bf16.msra.mxu1 %v1103_v48  ;;  %v859_v55 = vpop.f32.mrb[38].mxu0  ;;  %v1047_v60 = vmax.f32 %v968_v52, 0.0  ;;  %v1046_v61 = vmax.f32 %v857_v53, 0.0 }
 0x216   : > { %v1049_v57 = vmax.f32 %v859_v55, 0.0  ;;  %v972_v58 = vpop.f32.mrb[38].mxu1  ;;  %v861_v59 = vpop.f32.mrb[39].mxu0  ;;  %v1048_v2 = vmax.f32 %v970_v54, 0.0 }
 0x217   : > { %v1051_v62 = vmax.f32 %v972_v58, 0.0  ;;  %v1050_v63 = vmax.f32 %v861_v59, 0.0  ;;  %v974_v1 = vpop.f32.mrb[39].mxu1 }
 0x218   : > { %v1105_v3 = vpack.c.bf16 %v1049_v57, %v1045_v56  ;;  %v1052_v4 = vmax.f32 %v974_v1, 0.0 }
 0x219   : > { %v1107_v5 = vpack.c.bf16 %v1051_v62, %v1047_v60  ;;  %v1106_v6 = vpack.c.bf16 %v1050_v63, %v1046_v61 }
 0x21a   : > { %v1108_v7 = vpack.c.bf16 %v1052_v4, %v1048_v2 }
 0x21b   : > { %v865_v8 = vpop.f32.mrb[40].mxu0  ;;  %1200 = vmatprep.subr.bf16.mxu0 %v1106_v6 }
 0x21c   : > { %v978_v9 = vpop.f32.mrb[40].mxu1  ;;  %1313 = vmatprep.subr.bf16.mxu1 %v1108_v7  ;;  %v867_v10 = vpop.f32.mrb[41].mxu0  ;;  %1201 = vmatpush1.bf16.msra.mxu0 %v1105_v3  ;;  %v1053_v13 = vmax.f32 %v865_v8, 0.0 }
 0x21d   : > { %v980_v11 = vpop.f32.mrb[41].mxu1  ;;  %1314 = vmatpush1.bf16.msra.mxu1 %v1107_v5  ;;  %v869_v12 = vpop.f32.mrb[42].mxu0  ;;  %v1055_v17 = vmax.f32 %v978_v9, 0.0  ;;  %v1054_v18 = vmax.f32 %v867_v10, 0.0 }
 0x21e   : > { %v1057_v14 = vmax.f32 %v869_v12, 0.0  ;;  %v982_v15 = vpop.f32.mrb[42].mxu1  ;;  %v871_v16 = vpop.f32.mrb[43].mxu0  ;;  %v1056_v22 = vmax.f32 %v980_v11, 0.0 }
 0x21f   : > { %v1059_v19 = vmax.f32 %v982_v15, 0.0  ;;  %v1058_v20 = vmax.f32 %v871_v16, 0.0  ;;  %v984_v21 = vpop.f32.mrb[43].mxu1 }
 0x220   : > { %v1109_v23 = vpack.c.bf16 %v1057_v14, %v1053_v13  ;;  %v1060_v24 = vmax.f32 %v984_v21, 0.0 }
 0x221   : > { %v1111_v25 = vpack.c.bf16 %v1059_v19, %v1055_v17  ;;  %v1110_v26 = vpack.c.bf16 %v1058_v20, %v1054_v18 }
 0x222   : > { %v1112_v27 = vpack.c.bf16 %v1060_v24, %v1056_v22 }
 0x223   : > { %v875_v28 = vpop.f32.mrb[44].mxu0  ;;  %1202 = vmatprep.subr.bf16.mxu0 %v1110_v26 }
 0x224   : > { %v988_v29 = vpop.f32.mrb[44].mxu1  ;;  %1315 = vmatprep.subr.bf16.mxu1 %v1112_v27  ;;  %v877_v30 = vpop.f32.mrb[45].mxu0  ;;  %1203 = vmatpush1.bf16.msra.mxu0 %v1109_v23  ;;  %v1061_v33 = vmax.f32 %v875_v28, 0.0 }
 0x225   : > { %v990_v31 = vpop.f32.mrb[45].mxu1  ;;  %1316 = vmatpush1.bf16.msra.mxu1 %v1111_v25  ;;  %v879_v32 = vpop.f32.mrb[46].mxu0  ;;  %v1063_v37 = vmax.f32 %v988_v29, 0.0  ;;  %v1062_v38 = vmax.f32 %v877_v30, 0.0 }
 0x226   : > { %v1065_v34 = vmax.f32 %v879_v32, 0.0  ;;  %v992_v35 = vpop.f32.mrb[46].mxu1  ;;  %v881_v36 = vpop.f32.mrb[47].mxu0  ;;  %v1064_v42 = vmax.f32 %v990_v31, 0.0 }
 0x227   : > { %v1067_v39 = vmax.f32 %v992_v35, 0.0  ;;  %v1066_v40 = vmax.f32 %v881_v36, 0.0  ;;  %v994_v41 = vpop.f32.mrb[47].mxu1 }
 0x228   : > { %v1113_v43 = vpack.c.bf16 %v1065_v34, %v1061_v33  ;;  %v1068_v44 = vmax.f32 %v994_v41, 0.0 }
 0x229   : > { %v1115_v45 = vpack.c.bf16 %v1067_v39, %v1063_v37  ;;  %v1114_v46 = vpack.c.bf16 %v1066_v40, %v1062_v38 }
 0x22a   : > { %v1116_v47 = vpack.c.bf16 %v1068_v44, %v1064_v42 }
 0x22b   : > { %v885_v48 = vpop.f32.mrb[48].mxu0  ;;  %1204 = vmatprep.subr.bf16.mxu0 %v1114_v46 }
 0x22c   : > { %v998_v49 = vpop.f32.mrb[48].mxu1  ;;  %1317 = vmatprep.subr.bf16.mxu1 %v1116_v47  ;;  %v887_v50 = vpop.f32.mrb[49].mxu0  ;;  %1205 = vmatpush1.bf16.msra.mxu0 %v1113_v43  ;;  %v1069_v53 = vmax.f32 %v885_v48, 0.0 }
 0x22d   : > { %v1000_v51 = vpop.f32.mrb[49].mxu1  ;;  %1318 = vmatpush1.bf16.msra.mxu1 %v1115_v45  ;;  %v889_v52 = vpop.f32.mrb[50].mxu0  ;;  %v1071_v57 = vmax.f32 %v998_v49, 0.0  ;;  %v1070_v58 = vmax.f32 %v887_v50, 0.0 }
 0x22e   : > { %v1073_v54 = vmax.f32 %v889_v52, 0.0  ;;  %v1002_v55 = vpop.f32.mrb[50].mxu1  ;;  %v891_v56 = vpop.f32.mrb[51].mxu0  ;;  %v1072_v62 = vmax.f32 %v1000_v51, 0.0 }
 0x22f   : > { %v1075_v59 = vmax.f32 %v1002_v55, 0.0  ;;  %v1074_v60 = vmax.f32 %v891_v56, 0.0  ;;  %v1004_v61 = vpop.f32.mrb[51].mxu1 }
 0x230   : > { %v1117_v63 = vpack.c.bf16 %v1073_v54, %v1069_v53  ;;  %v1076_v1 = vmax.f32 %v1004_v61, 0.0 }
 0x231   : > { %v1119_v2 = vpack.c.bf16 %v1075_v59, %v1071_v57  ;;  %v1118_v3 = vpack.c.bf16 %v1074_v60, %v1070_v58 }
 0x232   : > { %v1120_v4 = vpack.c.bf16 %v1076_v1, %v1072_v62 }
 0x233   : > { %v895_v5 = vpop.f32.mrb[52].mxu0  ;;  %1206 = vmatprep.subr.bf16.mxu0 %v1118_v3  ;;  %v1811_v3 = vld [vmem:[%s2207_s3 + $0x48] sm:$0xff]  }
 0x234   : > { %v1008_v6 = vpop.f32.mrb[52].mxu1  ;;  %1319 = vmatprep.subr.bf16.mxu1 %v1120_v4  ;;  %v897_v7 = vpop.f32.mrb[53].mxu0  ;;  %1207 = vmatpush1.bf16.msra.mxu0 %v1117_v63  ;;  %v1077_v10 = vmax.f32 %v895_v5, 0.0  ;;  %v1812_v4 = vld [vmem:[%s2207_s3 + $0x50] sm:$0xff]   ;;  %v1813_v5 = vld [vmem:[%s2207_s3 + $0x58] sm:$0xff]  }
 0x235   : > { %v1010_v8 = vpop.f32.mrb[53].mxu1  ;;  %1320 = vmatpush1.bf16.msra.mxu1 %v1119_v2  ;;  %v899_v9 = vpop.f32.mrb[54].mxu0  ;;  %v1079_v14 = vmax.f32 %v1008_v6, 0.0  ;;  %v1078_v15 = vmax.f32 %v897_v7, 0.0  ;;  %v1810_v2 = vld [vmem:[%s2207_s3 + $0x40] sm:$0xff]   ;;  %v1815_v7 = vld [vmem:[%s2207_s3 + $0x68] sm:$0xff]  }
 0x236   : > { %v1081_v11 = vmax.f32 %v899_v9, 0.0  ;;  %v1012_v12 = vpop.f32.mrb[54].mxu1  ;;  %v901_v13 = vpop.f32.mrb[55].mxu0  ;;  %v1080_v19 = vmax.f32 %v1010_v8, 0.0  ;;  %v1814_v6 = vld [vmem:[%s2207_s3 + $0x60] sm:$0xff]   ;;  %v1816_v8 = vld [vmem:[%s2207_s3 + $0x70] sm:$0xff]  }
 0x237   : > { %v1083_v16 = vmax.f32 %v1012_v12, 0.0  ;;  %v1082_v17 = vmax.f32 %v901_v13, 0.0  ;;  %v1014_v18 = vpop.f32.mrb[55].mxu1  ;;  %v1817_v9 = vld [vmem:[%s2207_s3 + $0x78] sm:$0xff]  }
 0x238   : > { %v1121_v20 = vpack.c.bf16 %v1081_v11, %v1077_v10  ;;  %v1084_v21 = vmax.f32 %v1014_v18, 0.0 }
 0x239   : > { %v1123_v22 = vpack.c.bf16 %v1083_v16, %v1079_v14  ;;  %v1122_v23 = vpack.c.bf16 %v1082_v17, %v1078_v15 }
 0x23a   : > { %v1124_v24 = vpack.c.bf16 %v1084_v21, %v1080_v19 }
 0x23b   : > { %v905_v25 = vpop.f32.mrb[56].mxu0  ;;  %1208 = vmatprep.subr.bf16.mxu0 %v1122_v23 }
 0x23c   : > { %v1018_v26 = vpop.f32.mrb[56].mxu1  ;;  %1321 = vmatprep.subr.bf16.mxu1 %v1124_v24  ;;  %v907_v27 = vpop.f32.mrb[57].mxu0  ;;  %1209 = vmatpush1.bf16.msra.mxu0 %v1121_v20  ;;  %v1085_v30 = vmax.f32 %v905_v25, 0.0 }
 0x23d   : > { %v1020_v28 = vpop.f32.mrb[57].mxu1  ;;  %1322 = vmatpush1.bf16.msra.mxu1 %v1123_v22  ;;  %v909_v29 = vpop.f32.mrb[58].mxu0  ;;  %v1087_v34 = vmax.f32 %v1018_v26, 0.0  ;;  %v1086_v35 = vmax.f32 %v907_v27, 0.0 }
 0x23e   : > { %v1089_v31 = vmax.f32 %v909_v29, 0.0  ;;  %v1022_v32 = vpop.f32.mrb[58].mxu1  ;;  %v911_v33 = vpop.f32.mrb[59].mxu0  ;;  %v1088_v39 = vmax.f32 %v1020_v28, 0.0 }
 0x23f   : > { %v1091_v36 = vmax.f32 %v1022_v32, 0.0  ;;  %v1090_v37 = vmax.f32 %v911_v33, 0.0  ;;  %v1024_v38 = vpop.f32.mrb[59].mxu1 }
 0x240   : > { %v1125_v40 = vpack.c.bf16 %v1089_v31, %v1085_v30  ;;  %v1092_v41 = vmax.f32 %v1024_v38, 0.0 }
 0x241   : > { %v1127_v42 = vpack.c.bf16 %v1091_v36, %v1087_v34  ;;  %v1126_v43 = vpack.c.bf16 %v1090_v37, %v1086_v35 }
 0x242   : > { %v1128_v44 = vpack.c.bf16 %v1092_v41, %v1088_v39 }
 0x243   : > { %v915_v45 = vpop.f32.mrb[60].mxu0  ;;  %1210 = vmatprep.subr.bf16.mxu0 %v1126_v43 }
 0x244   : > { %v1028_v46 = vpop.f32.mrb[60].mxu1  ;;  %1323 = vmatprep.subr.bf16.mxu1 %v1128_v44  ;;  %v917_v47 = vpop.f32.mrb[61].mxu0  ;;  %1211 = vmatpush1.bf16.msra.mxu0 %v1125_v40  ;;  %v1093_v50 = vmax.f32 %v915_v45, 0.0 }
 0x245   : > { %v1030_v48 = vpop.f32.mrb[61].mxu1  ;;  %1324 = vmatpush1.bf16.msra.mxu1 %v1127_v42  ;;  %v919_v49 = vpop.f32.mrb[62].mxu0  ;;  %v1095_v54 = vmax.f32 %v1028_v46, 0.0  ;;  %v1094_v55 = vmax.f32 %v917_v47, 0.0 }
 0x246   : > { %v1097_v51 = vmax.f32 %v919_v49, 0.0  ;;  %v1032_v52 = vpop.f32.mrb[62].mxu1  ;;  %v921_v53 = vpop.f32.mrb[63].mxu0  ;;  %v1096_v59 = vmax.f32 %v1030_v48, 0.0 }
 0x247   : > { %v1099_v56 = vmax.f32 %v1032_v52, 0.0  ;;  %v1098_v57 = vmax.f32 %v921_v53, 0.0  ;;  %v1034_v58 = vpop.f32.mrb[63].mxu1 }
 0x248   : > { %v1129_v60 = vpack.c.bf16 %v1097_v51, %v1093_v50  ;;  %v1100_v61 = vmax.f32 %v1034_v58, 0.0 }
 0x249   : > { %v1131_v62 = vpack.c.bf16 %v1099_v56, %v1095_v54  ;;  %v1130_v63 = vpack.c.bf16 %v1098_v57, %v1094_v55 }
 0x24a   : > { %v1132_v1 = vpack.c.bf16 %v1100_v61, %v1096_v59 }
 0x24b   : > { %1212 = vmatprep.subr.bf16.mxu0 %v1130_v63 }
 0x24c   : > { %1325 = vmatprep.subr.bf16.mxu1 %v1132_v1  ;;  %1213 = vmatpush1.bf16.msra.mxu0 %v1129_v60 }
 0x24d   : > { %1326 = vmatpush1.bf16.msra.mxu1 %v1131_v62 }
 0x24f   : > { %1231 = vmatmul.mubr.bf16.vlgmr.msra.gmra.mrb[64].mxu0 %v1810_v2 }
 0x250   : > { %1344 = vmatmul.mubr.bf16.vlgmr.msra.gmra.mrb[64].mxu1 %v1810_v2  ;;  %1240 = vmatprep.mubr.bf16.mxu0 %v1882_v0 }
 0x251   : > { %1353 = vmatprep.mubr.bf16.mxu1 %v1882_v0 }
 0x257   : > { %1241 = vmatmul.mubr.bf16.gmra.mrb[68].mxu0 %v1811_v3 }
 0x258   : > { %1354 = vmatmul.mubr.bf16.gmra.mrb[68].mxu1 %v1811_v3  ;;  %1250 = vmatprep.mubr.bf16.mxu0 %v1882_v0 }
 0x259   : > { %1363 = vmatprep.mubr.bf16.mxu1 %v1882_v0 }
 0x25f   : > { %1251 = vmatmul.mubr.bf16.gmra.mrb[72].mxu0 %v1812_v4 }
 0x260   : > { %1364 = vmatmul.mubr.bf16.gmra.mrb[72].mxu1 %v1812_v4  ;;  %1260 = vmatprep.mubr.bf16.mxu0 %v1882_v0 }
 0x261   : > { %1373 = vmatprep.mubr.bf16.mxu1 %v1882_v0 }
 0x267   : > { %1261 = vmatmul.mubr.bf16.gmra.mrb[76].mxu0 %v1813_v5 }
 0x268   : > { %1374 = vmatmul.mubr.bf16.gmra.mrb[76].mxu1 %v1813_v5  ;;  %1270 = vmatprep.mubr.bf16.mxu0 %v1882_v0 }
 0x269   : > { %1383 = vmatprep.mubr.bf16.mxu1 %v1882_v0 }
 0x26f   : > { %1271 = vmatmul.mubr.bf16.gmra.mrb[80].mxu0 %v1814_v6 }
 0x270   : > { %1384 = vmatmul.mubr.bf16.gmra.mrb[80].mxu1 %v1814_v6  ;;  %1280 = vmatprep.mubr.bf16.mxu0 %v1882_v0 }
 0x271   : > { %1393 = vmatprep.mubr.bf16.mxu1 %v1882_v0 }
 0x277   : > { %1281 = vmatmul.mubr.bf16.gmra.mrb[84].mxu0 %v1815_v7 }
 0x278   : > { %1394 = vmatmul.mubr.bf16.gmra.mrb[84].mxu1 %v1815_v7  ;;  %1290 = vmatprep.mubr.bf16.mxu0 %v1882_v0 }
 0x279   : > { %1403 = vmatprep.mubr.bf16.mxu1 %v1882_v0 }
 0x27f   : > { %1291 = vmatmul.mubr.bf16.gmra.mrb[88].mxu0 %v1816_v8 }
 0x280   : > { %1404 = vmatmul.mubr.bf16.gmra.mrb[88].mxu1 %v1816_v8  ;;  %1300 = vmatprep.mubr.bf16.mxu0 %v1882_v0 }
 0x281   : > { %1413 = vmatprep.mubr.bf16.mxu1 %v1882_v0 }
 0x287   : > { %1301 = vmatmul.mubr.bf16.gmra.mrb[92].mxu0 %v1817_v9 }
 0x288   : > { %1414 = vmatmul.mubr.bf16.gmra.mrb[92].mxu1 %v1817_v9  ;;  %1553 = vmatprep.mubr.bf16.mxu0 %v1882_v0 }
 0x289   : > { %1594 = vmatprep.mubr.bf16.mxu1 %v1882_v0 }
 0x322   : > { %v1232_v10 = vpop.f32.mrb[64].mxu0 }
 0x323   : > { %v1345_v11 = vpop.f32.mrb[64].mxu1  ;;  %v1234_v12 = vpop.f32.mrb[65].mxu0  ;;  %v1424_v15 = vmax.f32 %v1232_v10, 0.0 }
 0x324   : > { %v1347_v13 = vpop.f32.mrb[65].mxu1  ;;  %v1236_v14 = vpop.f32.mrb[66].mxu0  ;;  %v1426_v19 = vmax.f32 %v1345_v11, 0.0  ;;  %v1425_v20 = vmax.f32 %v1234_v12, 0.0 }
 0x325   : > { %v1428_v16 = vmax.f32 %v1236_v14, 0.0  ;;  %v1349_v17 = vpop.f32.mrb[66].mxu1  ;;  %v1238_v18 = vpop.f32.mrb[67].mxu0  ;;  %v1427_v24 = vmax.f32 %v1347_v13, 0.0 }
 0x326   : > { %v1430_v21 = vmax.f32 %v1349_v17, 0.0  ;;  %v1429_v22 = vmax.f32 %v1238_v18, 0.0  ;;  %v1351_v23 = vpop.f32.mrb[67].mxu1 }
 0x327   : > { %v1488_v25 = vpack.c.bf16 %v1428_v16, %v1424_v15  ;;  %v1431_v26 = vmax.f32 %v1351_v23, 0.0 }
 0x328   : > { %v1490_v27 = vpack.c.bf16 %v1430_v21, %v1426_v19  ;;  %v1489_v28 = vpack.c.bf16 %v1429_v22, %v1425_v20 }
 0x329   : > { %v1491_v0 = vpack.c.bf16 %v1431_v26, %v1427_v24 }
 0x32a   : > { %v1242_v29 = vpop.f32.mrb[68].mxu0  ;;  %1521 = vmatprep.subr.bf16.mxu0 %v1489_v28 }
 0x32b   : > { %v1355_v30 = vpop.f32.mrb[68].mxu1  ;;  %1562 = vmatprep.subr.bf16.mxu1 %v1491_v0  ;;  %v1244_v31 = vpop.f32.mrb[69].mxu0  ;;  %1522 = vmatpush1.bf16.msra.mxu0 %v1488_v25  ;;  %v1432_v34 = vmax.f32 %v1242_v29, 0.0 }
 0x32c   : > { %v1357_v32 = vpop.f32.mrb[69].mxu1  ;;  %1563 = vmatpush1.bf16.msra.mxu1 %v1490_v27  ;;  %v1246_v33 = vpop.f32.mrb[70].mxu0  ;;  %v1434_v38 = vmax.f32 %v1355_v30, 0.0  ;;  %v1433_v39 = vmax.f32 %v1244_v31, 0.0 }
 0x32d   : > { %v1436_v35 = vmax.f32 %v1246_v33, 0.0  ;;  %v1359_v36 = vpop.f32.mrb[70].mxu1  ;;  %v1248_v37 = vpop.f32.mrb[71].mxu0  ;;  %v1435_v43 = vmax.f32 %v1357_v32, 0.0 }
 0x32e   : > { %v1438_v40 = vmax.f32 %v1359_v36, 0.0  ;;  %v1437_v41 = vmax.f32 %v1248_v37, 0.0  ;;  %v1361_v42 = vpop.f32.mrb[71].mxu1 }
 0x32f   : > { %v1492_v44 = vpack.c.bf16 %v1436_v35, %v1432_v34  ;;  %v1439_v45 = vmax.f32 %v1361_v42, 0.0 }
 0x330   : > { %v1494_v46 = vpack.c.bf16 %v1438_v40, %v1434_v38  ;;  %v1493_v47 = vpack.c.bf16 %v1437_v41, %v1433_v39 }
 0x331   : > { %v1495_v48 = vpack.c.bf16 %v1439_v45, %v1435_v43 }
 0x332   : > { %v1252_v49 = vpop.f32.mrb[72].mxu0  ;;  %1523 = vmatprep.subr.bf16.mxu0 %v1493_v47 }
 0x333   : > { %v1365_v50 = vpop.f32.mrb[72].mxu1  ;;  %1564 = vmatprep.subr.bf16.mxu1 %v1495_v48  ;;  %v1254_v51 = vpop.f32.mrb[73].mxu0  ;;  %1524 = vmatpush1.bf16.msra.mxu0 %v1492_v44  ;;  %v1440_v54 = vmax.f32 %v1252_v49, 0.0 }
 0x334   : > { %v1367_v52 = vpop.f32.mrb[73].mxu1  ;;  %1565 = vmatpush1.bf16.msra.mxu1 %v1494_v46  ;;  %v1256_v53 = vpop.f32.mrb[74].mxu0  ;;  %v1442_v58 = vmax.f32 %v1365_v50, 0.0  ;;  %v1441_v59 = vmax.f32 %v1254_v51, 0.0 }
 0x335   : > { %v1444_v55 = vmax.f32 %v1256_v53, 0.0  ;;  %v1369_v56 = vpop.f32.mrb[74].mxu1  ;;  %v1258_v57 = vpop.f32.mrb[75].mxu0  ;;  %v1443_v63 = vmax.f32 %v1367_v52, 0.0 }
 0x336   : > { %v1446_v60 = vmax.f32 %v1369_v56, 0.0  ;;  %v1445_v61 = vmax.f32 %v1258_v57, 0.0  ;;  %v1371_v62 = vpop.f32.mrb[75].mxu1 }
 0x337   : > { %v1496_v1 = vpack.c.bf16 %v1444_v55, %v1440_v54  ;;  %v1447_v2 = vmax.f32 %v1371_v62, 0.0 }
 0x338   : > { %v1498_v3 = vpack.c.bf16 %v1446_v60, %v1442_v58  ;;  %v1497_v4 = vpack.c.bf16 %v1445_v61, %v1441_v59 }
 0x339   : > { %v1499_v5 = vpack.c.bf16 %v1447_v2, %v1443_v63 }
 0x33a   : > { %v1262_v6 = vpop.f32.mrb[76].mxu0  ;;  %1525 = vmatprep.subr.bf16.mxu0 %v1497_v4 }
 0x33b   : > { %v1375_v7 = vpop.f32.mrb[76].mxu1  ;;  %1566 = vmatprep.subr.bf16.mxu1 %v1499_v5  ;;  %v1264_v8 = vpop.f32.mrb[77].mxu0  ;;  %1526 = vmatpush1.bf16.msra.mxu0 %v1496_v1  ;;  %v1448_v11 = vmax.f32 %v1262_v6, 0.0 }
 0x33c   : > { %v1377_v9 = vpop.f32.mrb[77].mxu1  ;;  %1567 = vmatpush1.bf16.msra.mxu1 %v1498_v3  ;;  %v1266_v10 = vpop.f32.mrb[78].mxu0  ;;  %v1450_v15 = vmax.f32 %v1375_v7, 0.0  ;;  %v1449_v16 = vmax.f32 %v1264_v8, 0.0 }
 0x33d   : > { %v1452_v12 = vmax.f32 %v1266_v10, 0.0  ;;  %v1379_v13 = vpop.f32.mrb[78].mxu1  ;;  %v1268_v14 = vpop.f32.mrb[79].mxu0  ;;  %v1451_v20 = vmax.f32 %v1377_v9, 0.0 }
 0x33e   : > { %v1454_v17 = vmax.f32 %v1379_v13, 0.0  ;;  %v1453_v18 = vmax.f32 %v1268_v14, 0.0  ;;  %v1381_v19 = vpop.f32.mrb[79].mxu1 }
 0x33f   : > { %v1500_v21 = vpack.c.bf16 %v1452_v12, %v1448_v11  ;;  %v1455_v22 = vmax.f32 %v1381_v19, 0.0 }
 0x340   : > { %v1502_v23 = vpack.c.bf16 %v1454_v17, %v1450_v15  ;;  %v1501_v24 = vpack.c.bf16 %v1453_v18, %v1449_v16 }
 0x341   : > { %v1503_v25 = vpack.c.bf16 %v1455_v22, %v1451_v20 }
 0x342   : > { %v1272_v26 = vpop.f32.mrb[80].mxu0  ;;  %1527 = vmatprep.subr.bf16.mxu0 %v1501_v24 }
 0x343   : > { %v1385_v27 = vpop.f32.mrb[80].mxu1  ;;  %1568 = vmatprep.subr.bf16.mxu1 %v1503_v25  ;;  %v1274_v28 = vpop.f32.mrb[81].mxu0  ;;  %1528 = vmatpush1.bf16.msra.mxu0 %v1500_v21  ;;  %v1456_v30 = vmax.f32 %v1272_v26, 0.0 }
 0x344   : > { %v1387_v0 = vpop.f32.mrb[81].mxu1  ;;  %1569 = vmatpush1.bf16.msra.mxu1 %v1502_v23  ;;  %v1276_v29 = vpop.f32.mrb[82].mxu0  ;;  %v1458_v34 = vmax.f32 %v1385_v27, 0.0  ;;  %v1457_v35 = vmax.f32 %v1274_v28, 0.0 }
 0x345   : > { %v1460_v31 = vmax.f32 %v1276_v29, 0.0  ;;  %v1389_v32 = vpop.f32.mrb[82].mxu1  ;;  %v1278_v33 = vpop.f32.mrb[83].mxu0  ;;  %v1459_v39 = vmax.f32 %v1387_v0, 0.0 }
 0x346   : > { %v1462_v36 = vmax.f32 %v1389_v32, 0.0  ;;  %v1461_v37 = vmax.f32 %v1278_v33, 0.0  ;;  %v1391_v38 = vpop.f32.mrb[83].mxu1 }
 0x347   : > { %v1504_v40 = vpack.c.bf16 %v1460_v31, %v1456_v30  ;;  %v1463_v41 = vmax.f32 %v1391_v38, 0.0 }
 0x348   : > { %v1506_v42 = vpack.c.bf16 %v1462_v36, %v1458_v34  ;;  %v1505_v43 = vpack.c.bf16 %v1461_v37, %v1457_v35 }
 0x349   : > { %v1507_v44 = vpack.c.bf16 %v1463_v41, %v1459_v39  ;;  %v1520_v41 = vld [vmem:[%s2208_s4] sm:$0xf] }
 0x34a   : > { %v1282_v45 = vpop.f32.mrb[84].mxu0  ;;  %1529 = vmatprep.subr.bf16.mxu0 %v1505_v43 }
 0x34b   : > { %v1395_v46 = vpop.f32.mrb[84].mxu1  ;;  %1570 = vmatprep.subr.bf16.mxu1 %v1507_v44  ;;  %v1284_v47 = vpop.f32.mrb[85].mxu0  ;;  %1530 = vmatpush1.bf16.msra.mxu0 %v1504_v40  ;;  %v1464_v50 = vmax.f32 %v1282_v45, 0.0 }
 0x34c   : > { %v1397_v48 = vpop.f32.mrb[85].mxu1  ;;  %1571 = vmatpush1.bf16.msra.mxu1 %v1506_v42  ;;  %v1286_v49 = vpop.f32.mrb[86].mxu0  ;;  %v1466_v54 = vmax.f32 %v1395_v46, 0.0  ;;  %v1465_v55 = vmax.f32 %v1284_v47, 0.0 }
 0x34d   : > { %v1468_v51 = vmax.f32 %v1286_v49, 0.0  ;;  %v1399_v52 = vpop.f32.mrb[86].mxu1  ;;  %v1288_v53 = vpop.f32.mrb[87].mxu0  ;;  %v1467_v59 = vmax.f32 %v1397_v48, 0.0 }
 0x34e   : > { %v1470_v56 = vmax.f32 %v1399_v52, 0.0  ;;  %v1469_v57 = vmax.f32 %v1288_v53, 0.0  ;;  %v1401_v58 = vpop.f32.mrb[87].mxu1 }
 0x34f   : > { %v1508_v60 = vpack.c.bf16 %v1468_v51, %v1464_v50  ;;  %v1471_v61 = vmax.f32 %v1401_v58, 0.0 }
 0x350   : > { %v1510_v62 = vpack.c.bf16 %v1470_v56, %v1466_v54  ;;  %v1509_v63 = vpack.c.bf16 %v1469_v57, %v1465_v55 }
 0x351   : > { %v1511_v1 = vpack.c.bf16 %v1471_v61, %v1467_v59 }
 0x352   : > { %v1292_v2 = vpop.f32.mrb[88].mxu0  ;;  %1531 = vmatprep.subr.bf16.mxu0 %v1509_v63 }
 0x353   : > { %v1405_v3 = vpop.f32.mrb[88].mxu1  ;;  %1572 = vmatprep.subr.bf16.mxu1 %v1511_v1  ;;  %v1294_v4 = vpop.f32.mrb[89].mxu0  ;;  %1532 = vmatpush1.bf16.msra.mxu0 %v1508_v60  ;;  %v1472_v7 = vmax.f32 %v1292_v2, 0.0 }
 0x354   : > { %v1407_v5 = vpop.f32.mrb[89].mxu1  ;;  %1573 = vmatpush1.bf16.msra.mxu1 %v1510_v62  ;;  %v1296_v6 = vpop.f32.mrb[90].mxu0  ;;  %v1474_v11 = vmax.f32 %v1405_v3, 0.0  ;;  %v1473_v12 = vmax.f32 %v1294_v4, 0.0 }
 0x355   : > { %v1476_v8 = vmax.f32 %v1296_v6, 0.0  ;;  %v1409_v9 = vpop.f32.mrb[90].mxu1  ;;  %v1298_v10 = vpop.f32.mrb[91].mxu0  ;;  %v1475_v16 = vmax.f32 %v1407_v5, 0.0 }
 0x356   : > { %v1478_v13 = vmax.f32 %v1409_v9, 0.0  ;;  %v1477_v14 = vmax.f32 %v1298_v10, 0.0  ;;  %v1411_v15 = vpop.f32.mrb[91].mxu1 }
 0x357   : > { %v1512_v17 = vpack.c.bf16 %v1476_v8, %v1472_v7  ;;  %v1479_v18 = vmax.f32 %v1411_v15, 0.0 }
 0x358   : > { %v1514_v19 = vpack.c.bf16 %v1478_v13, %v1474_v11  ;;  %v1513_v20 = vpack.c.bf16 %v1477_v14, %v1473_v12 }
 0x359   : > { %v1515_v21 = vpack.c.bf16 %v1479_v18, %v1475_v16 }
 0x35a   : > { %v1302_v22 = vpop.f32.mrb[92].mxu0  ;;  %1533 = vmatprep.subr.bf16.mxu0 %v1513_v20 }
 0x35b   : > { %v1415_v23 = vpop.f32.mrb[92].mxu1  ;;  %1574 = vmatprep.subr.bf16.mxu1 %v1515_v21  ;;  %v1304_v24 = vpop.f32.mrb[93].mxu0  ;;  %1534 = vmatpush1.bf16.msra.mxu0 %v1512_v17  ;;  %v1480_v27 = vmax.f32 %v1302_v22, 0.0 }
 0x35c   : > { %v1417_v25 = vpop.f32.mrb[93].mxu1  ;;  %1575 = vmatpush1.bf16.msra.mxu1 %v1514_v19  ;;  %v1306_v26 = vpop.f32.mrb[94].mxu0  ;;  %v1482_v30 = vmax.f32 %v1415_v23, 0.0  ;;  %v1481_v31 = vmax.f32 %v1304_v24, 0.0 }
 0x35d   : > { %v1484_v28 = vmax.f32 %v1306_v26, 0.0  ;;  %v1419_v0 = vpop.f32.mrb[94].mxu1  ;;  %v1308_v29 = vpop.f32.mrb[95].mxu0  ;;  %v1483_v35 = vmax.f32 %v1417_v25, 0.0 }
 0x35e   : > { %v1486_v32 = vmax.f32 %v1419_v0, 0.0  ;;  %v1485_v33 = vmax.f32 %v1308_v29, 0.0  ;;  %v1421_v34 = vpop.f32.mrb[95].mxu1 }
 0x35f   : > { %v1516_v36 = vpack.c.bf16 %v1484_v28, %v1480_v27  ;;  %v1487_v37 = vmax.f32 %v1421_v34, 0.0 }
 0x360   : > { %v1518_v38 = vpack.c.bf16 %v1486_v32, %v1482_v30  ;;  %v1517_v39 = vpack.c.bf16 %v1485_v33, %v1481_v31 }
 0x361   : > { %v1519_v40 = vpack.c.bf16 %v1487_v37, %v1483_v35 }
 0x362   : > { %1535 = vmatprep.subr.bf16.mxu0 %v1517_v39 }
 0x363   : > { %1576 = vmatprep.subr.bf16.mxu1 %v1519_v40  ;;  %1536 = vmatpush1.bf16.msra.mxu0 %v1516_v36 }
 0x364   : > { %1577 = vmatpush1.bf16.msra.mxu1 %v1518_v38 }
 0x366   : > { %1554 = vmatmul.mubr.bf16.vlgmr.msra.gmra.mrb[96].mxu0 %v1520_v41 }
 0x367   : > { %1595 = vmatmul.mubr.bf16.vlgmr.msra.gmra.mrb[96].mxu1 %v1520_v41 }
 0x439   : > { %v1555_v42 = vpop.f32.mrb[96].mxu0 }
 0x43a   : > { %1603 = vst [vmem:[%s218_s15] sm:$0xff] %v1555_v42  ;;  %v1596_v43 = vpop.f32.mrb[96].mxu1  ;;  %v1557_v44 = vpop.f32.mrb[97].mxu0 }
 0x43b   : > { %1605 = vst [vmem:[%s218_s15 + $0x10] sm:$0xff] %v1596_v43  ;;  %1604 = vst [vmem:[%s218_s15 + $0x8] sm:$0xff] %v1557_v44  ;;  %v1598_v45 = vpop.f32.mrb[97].mxu1  ;;  %v1559_v46 = vpop.f32.mrb[98].mxu0 }
 0x43c   : > { %1606 = vst [vmem:[%s218_s15 + $0x18] sm:$0xff] %v1598_v45  ;;  %v1600_v47 = vpop.f32.mrb[98].mxu1  ;;  %v1560_v48 = vpop.f32.mrb[99].mxu0 }
 0x43d   : > { %v1601_v49 = vpop.f32.mrb[99].mxu1 }
 0x43e   : > { %1831 = shalt.err (!%p1828_p3)
}
 0x43f   : > { %s1832_s8 = scalar_lea.hbm %s2162_s25, 512  ;;  %s1836_s11 = scalar_lea.hbm %s2209_s5, 1024 }
 0x440   : > { %p1833_p4 = scmp.ne.s32.totalorder %s2162_s25, %s1832_s8  ;;  %p1837_p9 = scmp.lt.u32.totalorder %s2162_s25, %s2209_s5 }
 0x441   : > { %p1838_p10 = scmp.lt.u32.totalorder %s1836_s11, %s1832_s8  ;;  %p1840_p12 = scmp.lt.u32.totalorder %s1832_s8, %s2162_s25 }
 0x442   : > { %p1834_p7 = pnand %p1833_p4, %p1952_p5 }
 0x443   : > { %p1839_p11 = por %p1838_p10, %p1837_p9 }
 0x444   : > { %p1835_p8 = pneg %p1834_p7 }
 0x445   : > { %p1841_p13 = por %p1840_p12, %p1839_p11 }
 0x447   : > { %p1842_p0 = pnand %p1841_p13, %p1835_p8 }
 0x449   : > { %1845 = shalt.err (!%p1842_p0)
}
 0x44a   : > { %1752 = dma.vmem_to_hbm [thread:$0]  (%p1952_p5), %s2164_s16, 512, %s2162_s25, %s1608_s22  }
 0x44b PF: > { %p1758_p1 = scmp.ge.s32.totalorder %s1880_s21, 2  ;;  %s1634_s14 = sand.u32 1, %s1868_s18  }
 0x44c   : > { %s1635_s15 = scalar_lea.sflag [#allocation3], %s1634_s14 }
 0x44d   : > { %p1755_p2 = pnand %p1758_p1, %p1956_p6 }
 0x44f   : > { %1863 = dma.done.wait (!%p1755_p2), %s1635_s15, 512  }
 0x450   : > { %1865 = vsyncadd (!%p1755_p2), %s1635_s15, 4294966784  ;;  %p15_p3 = scmp.ge.s32.totalorder %s1939_s24, 4   ;;  %s2212_s18 = smov %s1872_s19 }
 0x451   : > { %s2213_s19 = smov %s1876_s20  ;;  %s2214_s20 = smov %s1950_s27 }
 0x452   : > { %s2215_s21 = smov %s1939_s24  ;;  %17 = sbr.rel (!%p15_p3) target bundleno = 3 (0x3), region = 76 }
 0x459   :  { %1640 = vsyncpa [#allocation3], 1 }
 0x45a   :  { %1642 = vsyncpa [#allocation3 + $0x1], 1 }

</bundles_post_ra>
